<compile_context>
chip_gen: v5e
topology: v5e:2x2
jax: 0.10.0
libtpu: 0.0.40
codegen_flags: <defaults>
</compile_context>

<pallas_src>
import jax
import jax.numpy as jnp
from jax.experimental import pallas as pl
from jax.experimental.pallas import tpu as pltpu

# Real (PyTorch) layer sizes. Encoder: 784->128->64->12->3, decoder: 3->12->64->128->784.
LAYER_DIMS = [28 * 28, 128, 64, 12, 3, 12, 64, 128, 28 * 28]
N_LAYERS = len(LAYER_DIMS) - 1

IN_DIM = 28 * 28   # 784: unpadded kernel input / output width
HID_PAD = 128      # hidden widths (128/64/12/12/64/128) zero-padded to 128 lanes
N_MID = 5          # mid layers after folding 12->3->12 into one 128x128 matrix


def _round_up(n, m):
    return (n + m - 1) // m * m


def autoencoder_kernel(x_ref, w0_ref, wmid_ref, wlast_ref, b_ref, out_ref):
    """One batch tile: 7 MXU matmuls, bias/ReLU/tanh in f32 on VPU/EUP."""
    # Layer 0: (TB, 784) @ (784, 128).  bf16 cast done here (VPU cast is free
    # in a memory-bound kernel; saves a wrapper-side HBM pad/cast pass).
    h = jnp.dot(x_ref[...].astype(jnp.bfloat16), w0_ref[...],
                preferred_element_type=jnp.float32)
    h = jnp.maximum(h + b_ref[0:1, 0:HID_PAD], 0.0)

    # Mid layers (original layers 1, 2, 3*4 folded, 5, 6) -- all ReLU.
    # Unrolled at trace time; all matrices are zero-padded to 128x128 so the
    # dead lanes carry exact zeros through every layer.
    for i in range(N_MID):
        h = jnp.dot(h.astype(jnp.bfloat16), wmid_ref[i],
                    preferred_element_type=jnp.float32)
        h = jnp.maximum(h + b_ref[i + 1:i + 2, 0:HID_PAD], 0.0)

    # Last layer: (TB, 128) @ (128, 784) + Tanh, unpadded 784-wide store
    # (only the final 16 lanes of each 128-lane group are a masked vst).
    h = jnp.dot(h.astype(jnp.bfloat16), wlast_ref[...],
                preferred_element_type=jnp.float32)
    out_ref[...] = jnp.tanh(h + b_ref[6:7, :])


@jax.jit
def autoencoder_forward(x, params):
    w0, wmid, wlast, biases = params
    B = x.shape[0]
    x_flat = x.reshape(B, IN_DIM)  # ext.View(28*28); metadata-only

    # Batch tile selection:
    #  * tiny batch -> single tile (launch/DMA latency dominates)
    #  * otherwise aim for >= 4 grid steps (v7x megacore + DMA/compute overlap)
    #    with TB capped at 512 (safe within v5e's default scoped VMEM).
    if B <= 128:
        TB = _round_up(B, 8)
    else:
        TB = min(512, max(128, _round_up(pl.cdiv(B, 4), 8)))
    B_pad = _round_up(B, TB)

    # Only pad the batch dim when strictly needed; no lane padding, no cast.
    if B_pad == B:
        x_in = x_flat
    else:
        x_in = jnp.zeros((B_pad, IN_DIM), x_flat.dtype).at[:B].set(x_flat)

    grid = (B_pad // TB,)

    in_specs = [
        # x tile: streamed (double-buffered) per grid step, unpadded 784 wide.
        pl.BlockSpec((TB, IN_DIM), lambda i: (i, 0)),
        # Weights / biases: constant block index -> VMEM-resident across steps.
        # (Single-buffering them via pl.Buffered(1) would save ~0.5 MiB; not
        # needed at TB<=512.)
        pl.BlockSpec(w0.shape, lambda i: (0, 0)),
        pl.BlockSpec(wmid.shape, lambda i: (0, 0, 0)),
        pl.BlockSpec(wlast.shape, lambda i: (0, 0)),
        pl.BlockSpec(biases.shape, lambda i: (0, 0)),
    ]
    out_specs = pl.BlockSpec((TB, IN_DIM), lambda i: (i, 0))

    # Advisory cost model for XLA's scheduler (kept roughly truthful).
    flops = 2 * B_pad * (IN_DIM * HID_PAD
                         + N_MID * HID_PAD * HID_PAD
                         + HID_PAD * IN_DIM)
    bytes_accessed = (
        B_pad * IN_DIM * x_in.dtype.itemsize       # input
        + B_pad * IN_DIM * 4                       # f32 output
        + (w0.size + wmid.size + wlast.size) * 2   # bf16 weights
        + biases.size * 4                          # f32 biases
    )
    cost = pl.CostEstimate(flops=flops,
                           transcendentals=B_pad * IN_DIM,
                           bytes_accessed=bytes_accessed)

    out = pl.pallas_call(
        autoencoder_kernel,
        out_shape=jax.ShapeDtypeStruct((B_pad, IN_DIM), jnp.float32),
        grid=grid,
        in_specs=in_specs,
        out_specs=out_specs,
        compiler_params=pltpu.CompilerParams(
            dimension_semantics=("parallel",),
            vmem_limit_bytes=32 * 1024 * 1024),
        cost_estimate=cost,
    )(x_in, w0, wmid, wlast, biases)

    if B_pad != B:
        out = out[:B]
    # ext.View(1, 28, 28); metadata-only reshape.
    return out.reshape(B, 1, 28, 28)


def init_params(key):
    """Torch-default U(-1/sqrt(fan_in)) init, then fold/pack for the kernel.

    Returns (w0, wmid, wlast, biases):
      w0     (784, 128)    bf16  layer 0 weight (stored as W.T so kernel does x @ W)
      wmid   (5, 128, 128) bf16  layers 1, 2, (3*4 folded), 5, 6, zero-padded
      wlast  (128, 784)    bf16  last layer weight
      biases (7, 784)      f32   row i = bias of effective layer i, zero-padded
    """
    ws, bs = [], []
    for i in range(N_LAYERS):
        fan_in, fan_out = LAYER_DIMS[i], LAYER_DIMS[i + 1]
        key, kw, kb = jax.random.split(key, 3)
        bound = 1.0 / (fan_in ** 0.5)
        # PyTorch stores W as (out, in) and computes x @ W.T; we store W.T =
        # (in, out) so the kernel does x @ W directly (same math).
        ws.append(jax.random.uniform(kw, (fan_in, fan_out), jnp.float32, -bound, bound))
        bs.append(jax.random.uniform(kb, (fan_out,), jnp.float32, -bound, bound))

    # Fold layers 3 (12->3, no activation) and 4 (3->12): exact composition.
    w34 = ws[3] @ ws[4]                 # (12, 12)
    b34 = bs[3] @ ws[4] + bs[4]         # (12,)

    mid_ws = [ws[1], ws[2], w34, ws[5], ws[6]]
    mid_bs = [bs[1], bs[2], b34, bs[5], bs[6]]

    def pad2(w, rows, cols):
        return jnp.zeros((rows, cols), w.dtype).at[:w.shape[0], :w.shape[1]].set(w)

    w0 = ws[0].astype(jnp.bfloat16)                                   # (784, 128)
    wmid = jnp.stack([pad2(w, HID_PAD, HID_PAD) for w in mid_ws]
                     ).astype(jnp.bfloat16)                           # (5, 128, 128)
    wlast = ws[7].astype(jnp.bfloat16)                                # (128, 784)

    biases = jnp.zeros((N_MID + 2, IN_DIM), jnp.float32)
    biases = biases.at[0, :bs[0].shape[0]].set(bs[0])
    for i, b in enumerate(mid_bs):
        biases = biases.at[i + 1, :b.shape[0]].set(b)
    biases = biases.at[6, :].set(bs[7])

    return w0, wmid, wlast, biases


if __name__ == "__main__":
    key = jax.random.PRNGKey(0)
    key, kx = jax.random.split(key)

    B = 8  # small batch
    x = jax.random.normal(kx, (B, 1, 28, 28), dtype=jnp.float32)

    params = init_params(key)

    y = autoencoder_forward(x, params)
    y = jax.block_until_ready(y)

    assert y.shape == (B, 1, 28, 28), y.shape
    assert y.dtype == jnp.float32
    assert bool(jnp.all(jnp.isfinite(y)))
    # Tanh output range sanity check
    assert bool(jnp.all(jnp.abs(y) <= 1.0 + 1e-6))

    print("KERNEL_OK")
</pallas_src>

<mosaic_0001>
module attributes {stable_mosaic.version = 11 : i64} {
  func.func @autoencoder_kernel(%arg0: i32, %arg1: memref<8x784xf32, #tpu.memory_space<vmem>>, %arg2: memref<784x128xbf16, #tpu.memory_space<vmem>>, %arg3: memref<5x128x128xbf16, #tpu.memory_space<vmem>>, %arg4: memref<128x784xbf16, #tpu.memory_space<vmem>>, %arg5: memref<7x784xf32, #tpu.memory_space<vmem>>, %arg6: memref<8x784xf32, #tpu.memory_space<vmem>>) attributes {dimension_semantics = [#tpu.dimension_semantics<parallel>], iteration_bounds = array<i64: 1>, scalar_prefetch = 0 : i64, scratch_operands = 0 : i64, tpu.core_type = #tpu.core_type<tc>, window_params = [{transform_indices = @transform_0, window_bounds = array<i64: 8, 784>}, {pipeline_mode = #tpu.pipeline_mode<synchronous>, transform_indices = @transform_1, window_bounds = array<i64: 784, 128>}, {pipeline_mode = #tpu.pipeline_mode<synchronous>, transform_indices = @transform_2, window_bounds = array<i64: 5, 128, 128>}, {pipeline_mode = #tpu.pipeline_mode<synchronous>, transform_indices = @transform_3, window_bounds = array<i64: 128, 784>}, {pipeline_mode = #tpu.pipeline_mode<synchronous>, transform_indices = @transform_4, window_bounds = array<i64: 7, 784>}, {transform_indices = @transform_5, window_bounds = array<i64: 8, 784>}]} {
    %c0 = arith.constant 0 : index
    %c0_0 = arith.constant 0 : index
    %0 = vector.load %arg1[%c0, %c0_0] : memref<8x784xf32, #tpu.memory_space<vmem>>, vector<8x784xf32>
    %1 = arith.truncf %0 : vector<8x784xf32> to vector<8x784xbf16>
    %c0_1 = arith.constant 0 : index
    %c0_2 = arith.constant 0 : index
    %2 = vector.load %arg2[%c0_1, %c0_2] : memref<784x128xbf16, #tpu.memory_space<vmem>>, vector<784x128xbf16>
    %cst = arith.constant dense<0.000000e+00> : vector<8x128xf32>
    %3 = tpu.matmul %1, %2, %cst {dimension_numbers = #tpu.dot_dimension_numbers<[1], [0], [0], [1], [0, 0, 1, 1], [], []>} : vector<8x784xbf16>, vector<784x128xbf16>, vector<8x128xf32> -> vector<8x128xf32>
    %c0_3 = arith.constant 0 : index
    %c0_4 = arith.constant 0 : index
    %4 = vector.load %arg5[%c0_3, %c0_4] : memref<7x784xf32, #tpu.memory_space<vmem>>, vector<1x128xf32>
    %5 = vector.broadcast %4 : vector<1x128xf32> to vector<8x128xf32>
    %6 = arith.addf %3, %5 : vector<8x128xf32>
    %cst_5 = arith.constant 0.000000e+00 : f32
    %7 = vector.broadcast %cst_5 : f32 to vector<8x128xf32>
    %8 = arith.maximumf %6, %7 : vector<8x128xf32>
    %9 = arith.truncf %8 : vector<8x128xf32> to vector<8x128xbf16>
    %c0_6 = arith.constant 0 : index
    %c0_7 = arith.constant 0 : index
    %c0_8 = arith.constant 0 : index
    %10 = vector.load %arg3[%c0_6, %c0_7, %c0_8] : memref<5x128x128xbf16, #tpu.memory_space<vmem>>, vector<1x128x128xbf16>
    %11 = vector.shape_cast %10 : vector<1x128x128xbf16> to vector<128x128xbf16>
    %cst_9 = arith.constant dense<0.000000e+00> : vector<8x128xf32>
    %12 = tpu.matmul %9, %11, %cst_9 {dimension_numbers = #tpu.dot_dimension_numbers<[1], [0], [0], [1], [0, 0, 1, 1], [], []>} : vector<8x128xbf16>, vector<128x128xbf16>, vector<8x128xf32> -> vector<8x128xf32>
    %c1 = arith.constant 1 : index
    %c0_10 = arith.constant 0 : index
    %13 = vector.load %arg5[%c1, %c0_10] : memref<7x784xf32, #tpu.memory_space<vmem>>, vector<1x128xf32>
    %14 = vector.broadcast %13 : vector<1x128xf32> to vector<8x128xf32>
    %15 = arith.addf %12, %14 : vector<8x128xf32>
    %cst_11 = arith.constant 0.000000e+00 : f32
    %16 = vector.broadcast %cst_11 : f32 to vector<8x128xf32>
    %17 = arith.maximumf %15, %16 : vector<8x128xf32>
    %18 = arith.truncf %17 : vector<8x128xf32> to vector<8x128xbf16>
    %c1_12 = arith.constant 1 : index
    %c0_13 = arith.constant 0 : index
    %c0_14 = arith.constant 0 : index
    %19 = vector.load %arg3[%c1_12, %c0_13, %c0_14] : memref<5x128x128xbf16, #tpu.memory_space<vmem>>, vector<1x128x128xbf16>
    %20 = vector.shape_cast %19 : vector<1x128x128xbf16> to vector<128x128xbf16>
    %cst_15 = arith.constant dense<0.000000e+00> : vector<8x128xf32>
    %21 = tpu.matmul %18, %20, %cst_15 {dimension_numbers = #tpu.dot_dimension_numbers<[1], [0], [0], [1], [0, 0, 1, 1], [], []>} : vector<8x128xbf16>, vector<128x128xbf16>, vector<8x128xf32> -> vector<8x128xf32>
    %c2 = arith.constant 2 : index
    %c0_16 = arith.constant 0 : index
    %22 = vector.load %arg5[%c2, %c0_16] : memref<7x784xf32, #tpu.memory_space<vmem>>, vector<1x128xf32>
    %23 = vector.broadcast %22 : vector<1x128xf32> to vector<8x128xf32>
    %24 = arith.addf %21, %23 : vector<8x128xf32>
    %cst_17 = arith.constant 0.000000e+00 : f32
    %25 = vector.broadcast %cst_17 : f32 to vector<8x128xf32>
    %26 = arith.maximumf %24, %25 : vector<8x128xf32>
    %27 = arith.truncf %26 : vector<8x128xf32> to vector<8x128xbf16>
    %c2_18 = arith.constant 2 : index
    %c0_19 = arith.constant 0 : index
    %c0_20 = arith.constant 0 : index
    %28 = vector.load %arg3[%c2_18, %c0_19, %c0_20] : memref<5x128x128xbf16, #tpu.memory_space<vmem>>, vector<1x128x128xbf16>
    %29 = vector.shape_cast %28 : vector<1x128x128xbf16> to vector<128x128xbf16>
    %cst_21 = arith.constant dense<0.000000e+00> : vector<8x128xf32>
    %30 = tpu.matmul %27, %29, %cst_21 {dimension_numbers = #tpu.dot_dimension_numbers<[1], [0], [0], [1], [0, 0, 1, 1], [], []>} : vector<8x128xbf16>, vector<128x128xbf16>, vector<8x128xf32> -> vector<8x128xf32>
    %c3 = arith.constant 3 : index
    %c0_22 = arith.constant 0 : index
    %31 = vector.load %arg5[%c3, %c0_22] : memref<7x784xf32, #tpu.memory_space<vmem>>, vector<1x128xf32>
    %32 = vector.broadcast %31 : vector<1x128xf32> to vector<8x128xf32>
    %33 = arith.addf %30, %32 : vector<8x128xf32>
    %cst_23 = arith.constant 0.000000e+00 : f32
    %34 = vector.broadcast %cst_23 : f32 to vector<8x128xf32>
    %35 = arith.maximumf %33, %34 : vector<8x128xf32>
    %36 = arith.truncf %35 : vector<8x128xf32> to vector<8x128xbf16>
    %c3_24 = arith.constant 3 : index
    %c0_25 = arith.constant 0 : index
    %c0_26 = arith.constant 0 : index
    %37 = vector.load %arg3[%c3_24, %c0_25, %c0_26] : memref<5x128x128xbf16, #tpu.memory_space<vmem>>, vector<1x128x128xbf16>
    %38 = vector.shape_cast %37 : vector<1x128x128xbf16> to vector<128x128xbf16>
    %cst_27 = arith.constant dense<0.000000e+00> : vector<8x128xf32>
    %39 = tpu.matmul %36, %38, %cst_27 {dimension_numbers = #tpu.dot_dimension_numbers<[1], [0], [0], [1], [0, 0, 1, 1], [], []>} : vector<8x128xbf16>, vector<128x128xbf16>, vector<8x128xf32> -> vector<8x128xf32>
    %c4 = arith.constant 4 : index
    %c0_28 = arith.constant 0 : index
    %40 = vector.load %arg5[%c4, %c0_28] : memref<7x784xf32, #tpu.memory_space<vmem>>, vector<1x128xf32>
    %41 = vector.broadcast %40 : vector<1x128xf32> to vector<8x128xf32>
    %42 = arith.addf %39, %41 : vector<8x128xf32>
    %cst_29 = arith.constant 0.000000e+00 : f32
    %43 = vector.broadcast %cst_29 : f32 to vector<8x128xf32>
    %44 = arith.maximumf %42, %43 : vector<8x128xf32>
    %45 = arith.truncf %44 : vector<8x128xf32> to vector<8x128xbf16>
    %c4_30 = arith.constant 4 : index
    %c0_31 = arith.constant 0 : index
    %c0_32 = arith.constant 0 : index
    %46 = vector.load %arg3[%c4_30, %c0_31, %c0_32] : memref<5x128x128xbf16, #tpu.memory_space<vmem>>, vector<1x128x128xbf16>
    %47 = vector.shape_cast %46 : vector<1x128x128xbf16> to vector<128x128xbf16>
    %cst_33 = arith.constant dense<0.000000e+00> : vector<8x128xf32>
    %48 = tpu.matmul %45, %47, %cst_33 {dimension_numbers = #tpu.dot_dimension_numbers<[1], [0], [0], [1], [0, 0, 1, 1], [], []>} : vector<8x128xbf16>, vector<128x128xbf16>, vector<8x128xf32> -> vector<8x128xf32>
    %c5 = arith.constant 5 : index
    %c0_34 = arith.constant 0 : index
    %49 = vector.load %arg5[%c5, %c0_34] : memref<7x784xf32, #tpu.memory_space<vmem>>, vector<1x128xf32>
    %50 = vector.broadcast %49 : vector<1x128xf32> to vector<8x128xf32>
    %51 = arith.addf %48, %50 : vector<8x128xf32>
    %cst_35 = arith.constant 0.000000e+00 : f32
    %52 = vector.broadcast %cst_35 : f32 to vector<8x128xf32>
    %53 = arith.maximumf %51, %52 : vector<8x128xf32>
    %54 = arith.truncf %53 : vector<8x128xf32> to vector<8x128xbf16>
    %c0_36 = arith.constant 0 : index
    %c0_37 = arith.constant 0 : index
    %55 = vector.load %arg4[%c0_36, %c0_37] : memref<128x784xbf16, #tpu.memory_space<vmem>>, vector<128x784xbf16>
    %cst_38 = arith.constant dense<0.000000e+00> : vector<8x784xf32>
    %56 = tpu.matmul %54, %55, %cst_38 {dimension_numbers = #tpu.dot_dimension_numbers<[1], [0], [0], [1], [0, 0, 1, 1], [], []>} : vector<8x128xbf16>, vector<128x784xbf16>, vector<8x784xf32> -> vector<8x784xf32>
    %c6 = arith.constant 6 : index
    %c0_39 = arith.constant 0 : index
    %57 = vector.load %arg5[%c6, %c0_39] : memref<7x784xf32, #tpu.memory_space<vmem>>, vector<1x784xf32>
    %58 = vector.broadcast %57 : vector<1x784xf32> to vector<8x784xf32>
    %59 = arith.addf %56, %58 : vector<8x784xf32>
    %60 = math.tanh %59 : vector<8x784xf32>
    %c0_40 = arith.constant 0 : index
    %c0_41 = arith.constant 0 : index
    %61 = vector.load %arg6[%c0_40, %c0_41] : memref<8x784xf32, #tpu.memory_space<vmem>>, vector<8x784xf32>
    tpu.vector_store %arg6[%c0_40, %c0_41], %60 {strides = array<i32>} : memref<8x784xf32, #tpu.memory_space<vmem>>, vector<8x784xf32>,
    return
  }
  func.func @transform_0(%arg0: i32) -> (i32, i32) {
    %c0_i32 = arith.constant 0 : i32
    %c0_i32_0 = arith.constant 0 : i32
    return %arg0, %c0_i32 : i32, i32
  }
  func.func @transform_1(%arg0: i32) -> (i32, i32) {
    %c0_i32 = arith.constant 0 : i32
    %c0_i32_0 = arith.constant 0 : i32
    %c0_i32_1 = arith.constant 0 : i32
    return %c0_i32, %c0_i32_0 : i32, i32
  }
  func.func @transform_2(%arg0: i32) -> (i32, i32, i32) {
    %c0_i32 = arith.constant 0 : i32
    %c0_i32_0 = arith.constant 0 : i32
    %c0_i32_1 = arith.constant 0 : i32
    %c0_i32_2 = arith.constant 0 : i32
    return %c0_i32, %c0_i32_0, %c0_i32_1 : i32, i32, i32
  }
  func.func @transform_3(%arg0: i32) -> (i32, i32) {
    %c0_i32 = arith.constant 0 : i32
    %c0_i32_0 = arith.constant 0 : i32
    %c0_i32_1 = arith.constant 0 : i32
    return %c0_i32, %c0_i32_0 : i32, i32
  }
  func.func @transform_4(%arg0: i32) -> (i32, i32) {
    %c0_i32 = arith.constant 0 : i32
    %c0_i32_0 = arith.constant 0 : i32
    %c0_i32_1 = arith.constant 0 : i32
    return %c0_i32, %c0_i32_0 : i32, i32
  }
  func.func @transform_5(%arg0: i32) -> (i32, i32) {
    %c0_i32 = arith.constant 0 : i32
    %c0_i32_0 = arith.constant 0 : i32
    return %arg0, %c0_i32 : i32, i32
  }
}

</mosaic_0001>

<bundles_post_ra>
// kernel: autoencoder_forward.1
= control target key start
LH: loop header
LB: loop body
LE: loop exit
PB: predicated region body
PF: predicated region fallthrough
CT: control target
= control target key end

     0   :  { %vm428_vm0 = vcmask 130048   ;;  %s2916_s1 = inlined_call_operand.vmem [shape: bf16[784,128], index: 1, kind: input, shape index: {}]   ;;  %s2917_s0 = inlined_call_operand.vmem [shape: f32[8,784], index: 0, kind: input, shape index: {}]   ;;  %s2918_s2 = inlined_call_operand.vmem [shape: bf16[5,128,128], index: 2, kind: input, shape index: {}]   ;;  %s2919_s4 = inlined_call_operand.vmem [shape: f32[7,784], index: 4, kind: input, shape index: {}]   ;;  %s2920_s3 = inlined_call_operand.vmem [shape: bf16[128,784], index: 3, kind: input, shape index: {}]   ;;  %s2921_s5 = inlined_call_operand.vmem [shape: f32[8,784], index: 5, kind: output, shape index: {}]  }
   0x1   :  { %v2063_v0 = vld [vmem:[%s2916_s1 + $0x38] sm:$0xff]  ;;  %v2062_v3 = vld [vmem:[%s2916_s1 + $0x30] sm:$0xff]  ;;  %v2061_v8 = vld [vmem:[%s2916_s1 + $0x28] sm:$0xff] }
   0x2   :  { %v2071_v1 = vld [vmem:[%s2916_s1 + $0x78] sm:$0xff]  ;;  %432 = vmatpush.bf16.msra.mxu0 %v2063_v0  ;;  %v2070_v4 = vld [vmem:[%s2916_s1 + $0x70] sm:$0xff]  ;;  %v2069_v9 = vld [vmem:[%s2916_s1 + $0x68] sm:$0xff] }
   0x3   :  { %v2079_v2 = vld [vmem:[%s2916_s1 + $0xb8] sm:$0xff]  ;;  %445 = vmatpush.bf16.msra.mxu1 %v2071_v1  ;;  %v2078_v5 = vld [vmem:[%s2916_s1 + $0xb0] sm:$0xff]  ;;  %v2077_v10 = vld [vmem:[%s2916_s1 + $0xa8] sm:$0xff] }
   0x4   :  { %458 = vmatpush.bf16.msra.mxu2 %v2079_v2  ;;  %v2087_v6 = vld [vmem:[%s2916_s1 + $0xf8] sm:$0xff]  ;;  %v2086_v7 = vld [vmem:[%s2916_s1 + $0xf0] sm:$0xff]  ;;  %v2085_v11 = vld [vmem:[%s2916_s1 + $0xe8] sm:$0xff] }
   0x5   :  { %471 = vmatpush.bf16.msra.mxu3 %v2087_v6  ;;  %v2060_v12 = vld [vmem:[%s2916_s1 + $0x20] sm:$0xff]  ;;  %v2059_v16 = vld [vmem:[%s2916_s1 + $0x18] sm:$0xff]  ;;  %v2058_v20 = vld [vmem:[%s2916_s1 + $0x10] sm:$0xff] }
   0x6   :  { %433 = vmatpush.bf16.msra.mxu0 %v2062_v3  ;;  %v2068_v13 = vld [vmem:[%s2916_s1 + $0x60] sm:$0xff]  ;;  %v2067_v17 = vld [vmem:[%s2916_s1 + $0x58] sm:$0xff]  ;;  %v2066_v21 = vld [vmem:[%s2916_s1 + $0x50] sm:$0xff] }
   0x7   :  { %446 = vmatpush.bf16.msra.mxu1 %v2070_v4  ;;  %v2076_v14 = vld [vmem:[%s2916_s1 + $0xa0] sm:$0xff]  ;;  %v2075_v18 = vld [vmem:[%s2916_s1 + $0x98] sm:$0xff]  ;;  %v2074_v22 = vld [vmem:[%s2916_s1 + $0x90] sm:$0xff] }
   0x8   :  { %459 = vmatpush.bf16.msra.mxu2 %v2078_v5  ;;  %v2084_v15 = vld [vmem:[%s2916_s1 + $0xe0] sm:$0xff]  ;;  %v2083_v19 = vld [vmem:[%s2916_s1 + $0xd8] sm:$0xff]  ;;  %v2082_v23 = vld [vmem:[%s2916_s1 + $0xd0] sm:$0xff] }
   0x9   :  { %472 = vmatpush.bf16.msra.mxu3 %v2086_v7  ;;  %v2057_v24 = vld [vmem:[%s2916_s1 + $0x8] sm:$0xff]  ;;  %v2056_v27 = vld [vmem:[%s2916_s1] sm:$0xff]  ;;  %v2095_v32 = vld [vmem:[%s2916_s1 + $0x138] sm:$0xff] }
   0xa   :  { %434 = vmatpush.bf16.msra.mxu0 %v2061_v8  ;;  %v2065_v25 = vld [vmem:[%s2916_s1 + $0x48] sm:$0xff]  ;;  %v2064_v29 = vld [vmem:[%s2916_s1 + $0x40] sm:$0xff]  ;;  %v2103_v33 = vld [vmem:[%s2916_s1 + $0x178] sm:$0xff] }
   0xb   :  { %447 = vmatpush.bf16.msra.mxu1 %v2069_v9  ;;  %v2073_v26 = vld [vmem:[%s2916_s1 + $0x88] sm:$0xff]  ;;  %v21_v30 = vld [vmem:[%s2917_s0] sm:$0xff]  ;;  %v23_v35 = vld [vmem:[%s2917_s0 + $0x10] sm:$0xff] }
   0xc   :  { %460 = vmatpush.bf16.msra.mxu2 %v2077_v10  ;;  %v2081_v28 = vld [vmem:[%s2916_s1 + $0xc8] sm:$0xff]  ;;  %v2072_v34 = vld [vmem:[%s2916_s1 + $0x80] sm:$0xff]  ;;  %v28_v36 = vpack.c.bf16 %v21_v30, %v21_v30  ;;  %v24_v40 = vld [vmem:[%s2917_s0 + $0x18] sm:$0xff]  ;;  %v30_v43 = vpack.c.bf16 %v23_v35, %v23_v35 }
   0xd   :  { %473 = vmatpush.bf16.msra.mxu3 %v2085_v11  ;;  %v22_v31 = vld [vmem:[%s2917_s0 + $0x8] sm:$0xff]  ;;  %v2080_v38 = vld [vmem:[%s2916_s1 + $0xc0] sm:$0xff]  ;;  %v2094_v41 = vld [vmem:[%s2916_s1 + $0x130] sm:$0xff]  ;;  %v31_v44 = vpack.c.bf16 %v24_v40, %v24_v40 }
   0xe   :  { %435 = vmatpush.bf16.msra.mxu0 %v2060_v12  ;;  %v29_v37 = vpack.c.bf16 %v22_v31, %v22_v31  ;;  %v2104_v39 = vld [vmem:[%s2916_s1 + $0x180] sm:$0xff]  ;;  %v2102_v42 = vld [vmem:[%s2916_s1 + $0x170] sm:$0xff]  ;;  %v2093_v45 = vld [vmem:[%s2916_s1 + $0x128] sm:$0xff] }
   0xf   :  { %448 = vmatpush.bf16.msra.mxu1 %v2068_v13  ;;  %v2101_v46 = vld [vmem:[%s2916_s1 + $0x168] sm:$0xff]  ;;  %v2092_v47 = vld [vmem:[%s2916_s1 + $0x120] sm:$0xff]  ;;  %v2091_v49 = vld [vmem:[%s2916_s1 + $0x118] sm:$0xff] }
  0x10   :  { %461 = vmatpush.bf16.msra.mxu2 %v2076_v14  ;;  %v2100_v48 = vld [vmem:[%s2916_s1 + $0x160] sm:$0xff]  ;;  %v2099_v50 = vld [vmem:[%s2916_s1 + $0x158] sm:$0xff]  ;;  %v27_v51 = vld [vmem:[%s2917_s0 + $0x30] sm:$0xff] }
  0x11   :  { %474 = vmatpush.bf16.msra.mxu3 %v2084_v15  ;;  %v2090_v52 = vld [vmem:[%s2916_s1 + $0x110] sm:$0xff]  ;;  %v34_v54 = vpack.c.bf16 %v27_v51, %v27_v51  ;;  %v2089_v55 = vld [vmem:[%s2916_s1 + $0x108] sm:$0xff]  ;;  %v2088_v57 = vld [vmem:[%s2916_s1 + $0x100] sm:$0xff] }
  0x12   :  { %436 = vmatpush.bf16.msra.mxu0 %v2059_v16  ;;  %v2098_v53 = vld [vmem:[%s2916_s1 + $0x150] sm:$0xff]  ;;  %v2097_v56 = vld [vmem:[%s2916_s1 + $0x148] sm:$0xff]  ;;  %v2096_v58 = vld [vmem:[%s2916_s1 + $0x140] sm:$0xff] }
  0x13   :  { %449 = vmatpush.bf16.msra.mxu1 %v2067_v17  ;;  %v25_v59 = vld [vmem:[%s2917_s0 + $0x20] sm:$0xff]  ;;  %v26_v60 = vld [vmem:[%s2917_s0 + $0x28] sm:$0xff]  ;;  %v2112_v63 = vld [vmem:[%s2918_s2 + $0x38] sm:$0xff] }
  0x14   :  { %462 = vmatpush.bf16.msra.mxu2 %v2075_v18  ;;  %v32_v61 = vpack.c.bf16 %v25_v59, %v25_v59  ;;  %v33_v62 = vpack.c.bf16 %v26_v60, %v26_v60  ;;  %v2111_v0 = vld [vmem:[%s2918_s2 + $0x30] sm:$0xff]  ;;  %v2110_v1 = vld [vmem:[%s2918_s2 + $0x28] sm:$0xff]  ;;  %v2109_v2 = vld [vmem:[%s2918_s2 + $0x20] sm:$0xff] }
  0x15   :  { %475 = vmatpush.bf16.msra.mxu3 %v2083_v19  ;;  %v2108_v3 = vld [vmem:[%s2918_s2 + $0x18] sm:$0xff]  ;;  %v2107_v4 = vld [vmem:[%s2918_s2 + $0x10] sm:$0xff]  ;;  %v2106_v5 = vld [vmem:[%s2918_s2 + $0x8] sm:$0xff] }
  0x16   :  { %437 = vmatpush.bf16.msra.mxu0 %v2058_v20  ;;  %v2105_v8 = vld [vmem:[%s2918_s2] sm:$0xff]  ;;  %v2120_v11 = vld [vmem:[%s2918_s2 + $0x78] sm:$0xff]  ;;  %v2119_v14 = vld [vmem:[%s2918_s2 + $0x70] sm:$0xff] }
  0x17   :  { %450 = vmatpush.bf16.msra.mxu1 %v2066_v21  ;;  %v133_v15 = vld [vmem:[%s2919_s4] ss:$0 sm:$0xff]  ;;  %v2118_v16 = vld [vmem:[%s2918_s2 + $0x68] sm:$0xff]  ;;  %v2127_v40 = vld [vmem:[%s2918_s2 + $0xb0] sm:$0xff] }
  0x18   :  { %463 = vmatpush.bf16.msra.mxu2 %v2074_v22  ;;  %v2117_v20 = vld [vmem:[%s2918_s2 + $0x60] sm:$0xff]  ;;  %v2116_v22 = vld [vmem:[%s2918_s2 + $0x58] sm:$0xff]  ;;  %v2122_v51 = vld [vmem:[%s2918_s2 + $0x88] sm:$0xff] }
  0x19   :  { %476 = vmatpush.bf16.msra.mxu3 %v2082_v23  ;;  %v622_v59 = vld [vmem:[%s2919_s4 + $0x2] ss:$0 sm:$0xff] }
  0x1a   :  { %438 = vmatpush.bf16.msra.mxu0 %v2057_v24 }
  0x1b   :  { %451 = vmatpush.bf16.msra.mxu1 %v2065_v25  ;;  %v2115_v25 = vld [vmem:[%s2918_s2 + $0x50] sm:$0xff] }
  0x1c   :  { %464 = vmatpush.bf16.msra.mxu2 %v2073_v26 }
  0x1d   :  { %477 = vmatpush.bf16.msra.mxu3 %v2081_v28 }
  0x1e   :  { %439 = vmatpush.bf16.msra.mxu0 %v2056_v27 }
  0x1f   :  { %452 = vmatpush.bf16.msra.mxu1 %v2064_v29 }
  0x20   :  { %465 = vmatpush.bf16.msra.mxu2 %v2072_v34 }
  0x21   :  { %440 = vmatmul.bf16.vlgmr.msra.gmra.mxu0 %v28_v36  ;;  %478 = vmatpush.bf16.msra.mxu3 %v2080_v38  ;;  %v2113_v38 = vld [vmem:[%s2918_s2 + $0x40] sm:$0xff] }
  0x22   :  { %484 = vmatpush.bf16.msrb.mxu0 %v2095_v32  ;;  %453 = vmatmul.bf16.vlgmr.msra.gmra.mxu1 %v29_v37  ;;  %v2114_v37 = vld [vmem:[%s2918_s2 + $0x48] sm:$0xff] }
  0x23   :  { %497 = vmatpush.bf16.msrb.mxu1 %v2103_v33  ;;  %466 = vmatmul.bf16.vlgmr.msra.gmra.mxu2 %v30_v43  ;;  %v2124_v43 = vld [vmem:[%s2918_s2 + $0x98] sm:$0xff] }
  0x24   :  { %517 = vmatpush.bf16.msrb.mxu2 %v2104_v39  ;;  %479 = vmatmul.bf16.vlgmr.msra.gmra.mxu3 %v31_v44  ;;  %v2128_v39 = vld [vmem:[%s2918_s2 + $0xb8] sm:$0xff]  ;;  %v2123_v44 = vld [vmem:[%s2918_s2 + $0x90] sm:$0xff] }
  0x25   :  { %590 = vmatpush.bf16.msrb.mxu3 %v2112_v63 }
  0x26   :  { %485 = vmatpush.bf16.msrb.mxu0 %v2094_v41  ;;  %v2126_v41 = vld [vmem:[%s2918_s2 + $0xa8] sm:$0xff] }
  0x27   :  { %498 = vmatpush.bf16.msrb.mxu1 %v2102_v42  ;;  %v2125_v42 = vld [vmem:[%s2918_s2 + $0xa0] sm:$0xff] }
  0x28   :  { %671 = vmatpush.bf16.msra.mxu2 %v2120_v11 }
  0x29   :  { %591 = vmatpush.bf16.msrb.mxu3 %v2111_v0 }
  0x2a   :  { %486 = vmatpush.bf16.msrb.mxu0 %v2093_v45  ;;  %v541_v45 = vld [vmem:[%s2919_s4 + $0x1] ss:$0 sm:$0xff] }
  0x2b   :  { %499 = vmatpush.bf16.msrb.mxu1 %v2101_v46 }
  0x2c   :  { %672 = vmatpush.bf16.msra.mxu2 %v2119_v14 }
  0x2d   :  { %592 = vmatpush.bf16.msrb.mxu3 %v2110_v1  ;;  %v2130_v1 = vld [vmem:[%s2918_s2 + $0xc8] sm:$0xff] }
  0x2e   :  { %487 = vmatpush.bf16.msrb.mxu0 %v2092_v47 }
  0x2f   :  { %500 = vmatpush.bf16.msrb.mxu1 %v2100_v48 }
  0x30   :  { %673 = vmatpush.bf16.msra.mxu2 %v2118_v16  ;;  %v2137_v16 = vld [vmem:[%s2918_s2 + $0x100] sm:$0xff] }
  0x31   :  { %593 = vmatpush.bf16.msrb.mxu3 %v2109_v2  ;;  %v2129_v2 = vld [vmem:[%s2918_s2 + $0xc0] sm:$0xff] }
  0x32   :  { %488 = vmatpush.bf16.msrb.mxu0 %v2091_v49 }
  0x33   :  { %501 = vmatpush.bf16.msrb.mxu1 %v2099_v50  ;;  %1605 = vmatmul.msk.bf16.vlgmr.msrb.gmra.mxu2 %vm428_vm0, %v34_v54  ;;  %v2135_v54 = vld [vmem:[%s2918_s2 + $0xf0] sm:$0xff] }
  0x34   :  { %674 = vmatpush.bf16.msra.mxu2 %v2117_v20 }
  0x35   :  { %594 = vmatpush.bf16.msrb.mxu3 %v2108_v3  ;;  %v2144_v3 = vld [vmem:[%s2918_s2 + $0x138] sm:$0xff] }
  0x36   :  { %489 = vmatpush.bf16.msrb.mxu0 %v2090_v52  ;;  %v2121_v52 = vld [vmem:[%s2918_s2 + $0x80] sm:$0xff] }
  0x37   :  { %502 = vmatpush.bf16.msrb.mxu1 %v2098_v53  ;;  %v2136_v53 = vld [vmem:[%s2918_s2 + $0xf8] sm:$0xff] }
  0x38   :  { %675 = vmatpush.bf16.msra.mxu2 %v2116_v22  ;;  %v2038_v22 = vld [vmem:[%s2920_s3 + $0x190] sm:$0xf] }
  0x39   :  { %595 = vmatpush.bf16.msrb.mxu3 %v2107_v4  ;;  %v2143_v4 = vld [vmem:[%s2918_s2 + $0x130] sm:$0xff] }
  0x3a   :  { %490 = vmatpush.bf16.msrb.mxu0 %v2089_v55  ;;  %v2134_v55 = vld [vmem:[%s2918_s2 + $0xe8] sm:$0xff] }
  0x3b   :  { %503 = vmatpush.bf16.msrb.mxu1 %v2097_v56  ;;  %v2133_v56 = vld [vmem:[%s2918_s2 + $0xe0] sm:$0xff] }
  0x3c   :  { %676 = vmatpush.bf16.msra.mxu2 %v2115_v25 }
  0x3d   :  { %596 = vmatpush.bf16.msrb.mxu3 %v2106_v5  ;;  %v2142_v5 = vld [vmem:[%s2918_s2 + $0x128] sm:$0xff] }
  0x3e   :  { %491 = vmatpush.bf16.msrb.mxu0 %v2088_v57  ;;  %v2132_v57 = vld [vmem:[%s2918_s2 + $0xd8] sm:$0xff] }
  0x3f   :  { %504 = vmatpush.bf16.msrb.mxu1 %v2096_v58  ;;  %v2131_v58 = vld [vmem:[%s2918_s2 + $0xd0] sm:$0xff] }
  0x40   :  { %677 = vmatpush.bf16.msra.mxu2 %v2114_v37  ;;  %v2180_v37 = vld [vmem:[%s2920_s3 + $0x11c] sm:$0xf] }
  0x41   :  { %492 = vmatmul.bf16.vlgmr.msrb.gmra.mxu0 %v32_v61  ;;  %597 = vmatpush.bf16.msrb.mxu3 %v2105_v8  ;;  %v2139_v8 = vld [vmem:[%s2918_s2 + $0x110] sm:$0xff] }
  0x42   :  { %505 = vmatmul.bf16.vlgmr.msrb.gmra.mxu1 %v33_v62  ;;  %752 = vmatpush.bf16.msra.mxu0 %v2128_v39  ;;  %v1982_v39 = vld [vmem:[%s2920_s3 + $0x120] sm:$0xf] }
  0x43   :  { %833 = vmatpush.bf16.msra.mxu1 %v2136_v53  ;;  %v2188_v53 = vld [vmem:[%s2920_s3 + $0x15c] sm:$0xf] }
  0x44   :  { %678 = vmatpush.bf16.msra.mxu2 %v2113_v38  ;;  %v1976_v38 = vld [vmem:[%s2920_s3 + $0x134] sm:$0xf0] }
  0x45   :  { %914 = vmatpush.bf16.msra.mxu3 %v2144_v3 }
  0x46   :  { %753 = vmatpush.bf16.msra.mxu0 %v2127_v40  ;;  %v2184_v40 = vld [vmem:[%s2920_s3 + $0x138] sm:$0xf0] }
  0x47   :  { %834 = vmatpush.bf16.msra.mxu1 %v2135_v54 }
  0x49   :  { %915 = vmatpush.bf16.msra.mxu3 %v2143_v4  ;;  %v1890_v4 = vld [vmem:[%s2920_s3 + $0x70] sm:$0xf] }
  0x4a   :  { %754 = vmatpush.bf16.msra.mxu0 %v2126_v41 }
  0x4b   :  { %835 = vmatpush.bf16.msra.mxu1 %v2134_v55  ;;  %v1918_v55 = vld [vmem:[%s2920_s3 + $0xa8] sm:$0xf] }
  0x4d   :  { %916 = vmatpush.bf16.msra.mxu3 %v2142_v5  ;;  %v2162_v5 = vld [vmem:[%s2920_s3 + $0x88] sm:$0xf0] }
  0x4e   :  { %755 = vmatpush.bf16.msra.mxu0 %v2125_v42  ;;  %v1946_v42 = vld [vmem:[%s2920_s3 + $0xe0] sm:$0xf] }
  0x4f   :  { %836 = vmatpush.bf16.msra.mxu1 %v2133_v56  ;;  %v2169_v56 = vld [vmem:[%s2920_s3 + $0xc0] sm:$0xf0] }
  0x50   :  { %v1919_v3 = vor.u32 %v2169_v56, %v1918_v55  ;;  %v2018_v55 = vld [vmem:[%s2920_s3 + $0x160] sm:$0xf] }
  0x52   :  { %756 = vmatpush.bf16.msra.mxu0 %v2124_v43  ;;  %v2176_v43 = vld [vmem:[%s2920_s3 + $0xf8] sm:$0xf0] }
  0x53   :  { %837 = vmatpush.bf16.msra.mxu1 %v2132_v57  ;;  %v1947_v54 = vor.u32 %v2176_v43, %v1946_v42  ;;  %v2012_v57 = vld [vmem:[%s2920_s3 + $0x174] sm:$0xf0]  ;;  %v2196_v42 = vld [vmem:[%s2920_s3 + $0x19c] sm:$0xf] }
  0x54   :  { %v2048_v43 = vld [vmem:[%s2920_s3 + $0x1b4] sm:$0xf0] }
  0x56   :  { %757 = vmatpush.bf16.msra.mxu0 %v2123_v44  ;;  %v1979_v44 = vor.u32 %v2180_v37, %v1976_v38  ;;  %v1842_v37 = vld [vmem:[%s2920_s3 + $0x8] sm:$0xf]  ;;  %v2149_v38 = vld [vmem:[%s2920_s3 + $0x20] sm:$0xf0] }
  0x57   :  { %838 = vmatpush.bf16.msra.mxu1 %v2131_v58 }
  0x5a   :  { %758 = vmatpush.bf16.msra.mxu0 %v2122_v51  ;;  %v2177_v51 = vld [vmem:[%s2920_s3 + $0x100] sm:$0xf0] }
  0x5b   :  { %839 = vmatpush.bf16.msra.mxu1 %v2130_v1  ;;  %v2181_v1 = vld [vmem:[%s2920_s3 + $0x124] sm:$0xf] }
  0x5e   :  { %759 = vmatpush.bf16.msra.mxu0 %v2121_v52 }
  0x5f   :  { %840 = vmatpush.bf16.msra.mxu1 %v2129_v2  ;;  %v1984_v2 = vld [vmem:[%s2920_s3 + $0x13c] sm:$0xf0] }
  0x9e   :  { %v441_v6 = vpop.f32.mrf.mxu0 }
  0x9f   :  { %v454_v7 = vpop.f32.mrf.mxu1  ;;  %v442_v17 = vadd.f32 %v441_v6, %v133_v15  ;;  %v2141_v6 = vld [vmem:[%s2918_s2 + $0x120] sm:$0xff]  ;;  %v2138_v15 = vld [vmem:[%s2918_s2 + $0x108] sm:$0xff] }
  0xa0   :  { %917 = vmatpush.bf16.msra.mxu3 %v2141_v6  ;;  %v1987_v6 = vor.u32 %v2181_v1, %v1984_v2 }
  0xa1   :  { %v455_v21 = vadd.f32 %v454_v7, %v442_v17  ;;  %v2140_v7 = vld [vmem:[%s2918_s2 + $0x118] sm:$0xff]  ;;  %v2030_v17 = vld [vmem:[%s2920_s3 + $0x188] sm:$0xf] }
  0xa4   :  { %918 = vmatpush.bf16.msra.mxu3 %v2140_v7 }
  0xa6   :  { %v443_v9 = vpop.f32.mrf.mxu0  ;;  %v467_v12 = vpop.f32.mrf.mxu2 }
  0xa7   :  { %v456_v10 = vpop.f32.mrf.mxu1  ;;  %v480_v13 = vpop.f32.mrf.mxu3  ;;  %v468_v23 = vadd.f32 %v467_v12, %v455_v21  ;;  %v703_v9 = vld [vmem:[%s2919_s4 + $0x3] ss:$0 sm:$0xff]  ;;  %v2032_v21 = vld [vmem:[%s2920_s3 + $0x1a4] sm:$0xf0] }
  0xa8   :  { %919 = vmatpush.bf16.msra.mxu3 %v2139_v8 }
  0xa9   :  { %v481_v26 = vadd.f32 %v480_v13, %v468_v23  ;;  %v2198_v23 = vld [vmem:[%s2920_s3 + $0x1a8] sm:$0xf0] }
  0xaa   :  { %v2039_v25 = vor.u32 %v2198_v23, %v2038_v22  ;;  %v2167_v22 = vld [vmem:[%s2920_s3 + $0xb4] sm:$0xf]  ;;  %v1928_v23 = vld [vmem:[%s2920_s3 + $0xcc] sm:$0xf0] }
  0xac   :  { %920 = vmatpush.bf16.msra.mxu3 %v2138_v15  ;;  %1326 = vmatpush.bf16.msrb.mxu1 %v2039_v25  ;;  %v1891_v15 = vor.u32 %v2162_v5, %v1890_v4  ;;  %v1870_v25 = vld [vmem:[%s2920_s3 + $0x40] sm:$0xf]  ;;  %v1990_v5 = vld [vmem:[%s2920_s3 + $0x128] sm:$0xf] }
  0xad   :  { %v1872_v4 = vld [vmem:[%s2920_s3 + $0x5c] sm:$0xf0] }
  0xae   :  { %v469_v18 = vpop.f32.mrf.mxu2 }
  0xaf   :  { %v482_v19 = vpop.f32.mrf.mxu3  ;;  %v2197_v18 = vld [vmem:[%s2920_s3 + $0x1a0] sm:$0xf0] }
  0xb0   :  { %921 = vmatpush.bf16.msra.mxu3 %v2137_v16  ;;  %v2194_v19 = vld [vmem:[%s2920_s3 + $0x18c] sm:$0xf]  ;;  %v2031_v20 = vor.u32 %v2197_v18, %v2030_v17  ;;  %v1862_v16 = vld [vmem:[%s2920_s3 + $0x38] sm:$0xf]  ;;  %v2155_v17 = vld [vmem:[%s2920_s3 + $0x50] sm:$0xf0] }
  0xb2   :  { %1300 = vmatpush.bf16.msrb.mxu2 %v2031_v20 }
  0xb6   :  { %v519_v24 = vpop.f32.mrf.mxu2 }
  0xbe   :  { %v493_v27 = vpop.f32.mrf.mxu0  ;;  %v521_v31 = vpop.f32.mrf.mxu2 }
  0xbf   :  { %v506_v28 = vpop.f32.mrf.mxu1  ;;  %v494_v29 = vadd.f32 %v493_v27, %v481_v26  ;;  %v2002_v26 = vld [vmem:[%s2920_s3 + $0x150] sm:$0xf]  ;;  %v2190_v27 = vld [vmem:[%s2920_s3 + $0x168] sm:$0xf0]  ;;  %v2010_v31 = vld [vmem:[%s2920_s3 + $0x158] sm:$0xf] }
  0xc1   :  { %v507_v30 = vadd.f32 %v506_v28, %v494_v29  ;;  %v2187_v28 = vld [vmem:[%s2920_s3 + $0x154] sm:$0xf]  ;;  %v2003_v29 = vor.u32 %v2190_v27, %v2002_v26  ;;  %v2156_v26 = vld [vmem:[%s2920_s3 + $0x58] sm:$0xf0]  ;;  %v784_v27 = vld [vmem:[%s2919_s4 + $0x4] ss:$0 sm:$0xff] }
  0xc3   :  { %v520_v32 = vadd.f32 %v519_v24, %v507_v30  ;;  %v2035_v24 = vor.u32 %v2194_v19, %v2032_v21  ;;  %v2004_v30 = vld [vmem:[%s2920_s3 + $0x16c] sm:$0xf0]  ;;  %1301 = vmatpush.bf16.msrb.mxu2 %v2003_v29  ;;  %v2152_v21 = vld [vmem:[%s2920_s3 + $0x3c] sm:$0xf]  ;;  %v1834_v29 = vld [vmem:[%s2920_s3] sm:$0xf] }
  0xc5   :  { %v523_v33 = vmax.f32 %v520_v32, 0.0  ;;  %v2191_v32 = vld [vmem:[%s2920_s3 + $0x170] sm:$0xf0]  ;;  %1313 = vmatpush.bf16.msrb.mxu0 %v2035_v24  ;;  %v1864_v24 = vld [vmem:[%s2920_s3 + $0x54] sm:$0xf0] }
  0xc6   :  { %v495_v34 = vpop.f32.mrf.mxu0 }
  0xc7   :  { %v508_v35 = vpop.f32.mrf.mxu1  ;;  %v524_v36 = vpack.c.bf16 %v523_v33, %v523_v33  ;;  %v2007_v33 = vor.u32 %v2187_v28, %v2004_v30  ;;  %v2011_v34 = vor.u32 %v2191_v32, %v2010_v31  ;;  %v1863_v28 = vor.u32 %v2155_v17, %v1862_v16  ;;  %v2148_v30 = vld [vmem:[%s2920_s3 + $0x18] sm:$0xf0]  ;;  %v2145_v31 = vld [vmem:[%s2920_s3 + $0x4] sm:$0xf]  ;;  %v1844_v16 = vld [vmem:[%s2920_s3 + $0x24] sm:$0xf0] }
  0xc8   :  { %v1974_v35 = vld [vmem:[%s2920_s3 + $0x118] sm:$0xf]  ;;  %v1931_v32 = vor.u32 %v2167_v22, %v1928_v23  ;;  %v1962_v17 = vld [vmem:[%s2920_s3 + $0xf0] sm:$0xf] }
  0xc9   :  { %598 = vmatmul.bf16.vlgmr.msrb.gmra.mxu3 %v524_v36  ;;  %v2183_v36 = vld [vmem:[%s2920_s3 + $0x130] sm:$0xf0]  ;;  %1314 = vmatpush.bf16.msrb.mxu0 %v2007_v33 }
  0xca   :  { %v1975_v41 = vor.u32 %v2183_v36, %v1974_v35  ;;  %1327 = vmatpush.bf16.msrb.mxu1 %v2011_v34  ;;  %v1867_v34 = vor.u32 %v2152_v21, %v1864_v24  ;;  %v1871_v35 = vor.u32 %v2156_v26, %v1870_v25  ;;  %v1836_v36 = vld [vmem:[%s2920_s3 + $0x1c] sm:$0xf0]  ;;  %v1964_v21 = vld [vmem:[%s2920_s3 + $0x10c] sm:$0xf0]  ;;  %v1970_v24 = vld [vmem:[%s2920_s3 + $0xf8] sm:$0xf] }
  0xcb   :  { %v2179_v25 = vld [vmem:[%s2920_s3 + $0x110] sm:$0xf0] }
  0xcc   :  { %1302 = vmatpush.bf16.msrb.mxu2 %v1975_v41  ;;  %v2199_v41 = vld [vmem:[%s2920_s3 + $0x1b0] sm:$0xf0]  ;;  %v1971_v26 = vor.u32 %v2179_v25, %v1970_v24 }
  0xcd   :  { %1315 = vmatpush.bf16.msrb.mxu0 %v1979_v44  ;;  %v2054_v44 = vld [vmem:[%s2920_s3 + $0x1a0] sm:$0xf] }
  0xd0   :  { %1303 = vmatpush.bf16.msrb.mxu2 %v1947_v54  ;;  %v2051_v54 = vor.u32 %v2196_v42, %v2048_v43  ;;  %v2165_v42 = vld [vmem:[%s2920_s3 + $0xa0] sm:$0xf0] }
  0xd4   :  { %1304 = vmatpush.bf16.msrb.mxu2 %v1919_v3  ;;  %v2153_v3 = vld [vmem:[%s2920_s3 + $0x44] sm:$0xf] }
  0xd8   :  { %1305 = vmatpush.bf16.msrb.mxu2 %v1891_v15  ;;  %v2146_v15 = vld [vmem:[%s2920_s3 + $0xc] sm:$0xf] }
  0xdc   :  { %1306 = vmatpush.bf16.msrb.mxu2 %v1863_v28  ;;  %v2171_v28 = vld [vmem:[%s2920_s3 + $0xd0] sm:$0xf0] }
 0x14c   :  { %v599_v46 = vpop.f32.mrf.mxu3 }
 0x14d   :  { %v600_v47 = vadd.f32 %v599_v46, %v541_v45  ;;  %v1983_v45 = vor.u32 %v2184_v40, %v1982_v39  ;;  %v2173_v46 = vld [vmem:[%s2920_s3 + $0xe4] sm:$0xf]  ;;  %v2046_v40 = vld [vmem:[%s2920_s3 + $0x198] sm:$0xf] }
 0x14f   :  { %v603_v48 = vmax.f32 %v600_v47, 0.0  ;;  %v2195_v47 = vld [vmem:[%s2920_s3 + $0x194] sm:$0xf]  ;;  %1328 = vmatpush.bf16.msrb.mxu1 %v1983_v45  ;;  %v2200_v45 = vld [vmem:[%s2920_s3 + $0x1b8] sm:$0xf0] }
 0x150   :  { %v2055_v56 = vor.u32 %v2200_v45, %v2054_v44  ;;  %v1878_v45 = vld [vmem:[%s2920_s3 + $0x48] sm:$0xf] }
 0x151   :  { %v604_v49 = vpack.c.bf16 %v603_v48, %v603_v48  ;;  %v2040_v48 = vld [vmem:[%s2920_s3 + $0x1ac] sm:$0xf0] }
 0x152   :  { %v2043_v52 = vor.u32 %v2195_v47, %v2040_v48  ;;  %v1835_v47 = vor.u32 %v2148_v30, %v1834_v29  ;;  %v2160_v48 = vld [vmem:[%s2920_s3 + $0x7c] sm:$0xf] }
 0x153   :  { %679 = vmatmul.bf16.vlgmr.msra.gmra.mxu2 %v604_v49  ;;  %v1948_v49 = vld [vmem:[%s2920_s3 + $0xfc] sm:$0xf0]  ;;  %v2168_v29 = vld [vmem:[%s2920_s3 + $0xbc] sm:$0xf] }
 0x154   :  { %v601_v50 = vpop.f32.mrf.mxu3  ;;  %1339 = vmatpush.bf16.msrb.mxu3 %v2043_v52  ;;  %v1951_v58 = vor.u32 %v2173_v46, %v1948_v49  ;;  %v1900_v49 = vld [vmem:[%s2920_s3 + $0x94] sm:$0xf0]  ;;  %1307 = vmatpush.bf16.msrb.mxu2 %v1835_v47  ;;  %v2154_v47 = vld [vmem:[%s2920_s3 + $0x4c] sm:$0xf] }
 0x155   :  { %v1954_v50 = vld [vmem:[%s2920_s3 + $0xe8] sm:$0xf] }
 0x156   :  { %1316 = vmatpush.bf16.msrb.mxu0 %v1951_v58  ;;  %v2192_v58 = vld [vmem:[%s2920_s3 + $0x178] sm:$0xf0] }
 0x1d6   :  { %v680_v60 = vpop.f32.mrf.mxu2 }
 0x1d7   :  { %v681_v61 = vadd.f32 %v680_v60, %v622_v59  ;;  %v1955_v59 = vor.u32 %v2177_v51, %v1954_v50  ;;  %v2166_v60 = vld [vmem:[%s2920_s3 + $0xac] sm:$0xf]  ;;  %v1839_v50 = vor.u32 %v2145_v31, %v1836_v36  ;;  %v1843_v51 = vor.u32 %v2149_v38, %v1842_v37  ;;  %v1936_v31 = vld [vmem:[%s2920_s3 + $0xd4] sm:$0xf0]  ;;  %v1906_v36 = vld [vmem:[%s2920_s3 + $0x80] sm:$0xf] }
 0x1d8   :  { %v2164_v37 = vld [vmem:[%s2920_s3 + $0x98] sm:$0xf0]  ;;  %v2161_v38 = vld [vmem:[%s2920_s3 + $0x84] sm:$0xf] }
 0x1d9   :  { %v684_v62 = vmax.f32 %v681_v61, 0.0  ;;  %v1920_v61 = vld [vmem:[%s2920_s3 + $0xc4] sm:$0xf0]  ;;  %1329 = vmatpush.bf16.msrb.mxu1 %v1955_v59  ;;  %v2189_v59 = vld [vmem:[%s2920_s3 + $0x164] sm:$0xf] }
 0x1da   :  { %v1923_v7 = vor.u32 %v2166_v60, %v1920_v61  ;;  %v2020_v60 = vld [vmem:[%s2920_s3 + $0x17c] sm:$0xf0]  ;;  %v2026_v61 = vld [vmem:[%s2920_s3 + $0x168] sm:$0xf] }
 0x1db   :  { %v685_v63 = vpack.c.bf16 %v684_v62, %v684_v62  ;;  %v1926_v62 = vld [vmem:[%s2920_s3 + $0xb0] sm:$0xf]  ;;  %v2023_v1 = vor.u32 %v2189_v59, %v2020_v60  ;;  %v2151_v59 = vld [vmem:[%s2920_s3 + $0x30] sm:$0xf0] }
 0x1dc   :  { %1317 = vmatpush.bf16.msrb.mxu0 %v1923_v7  ;;  %v2185_v7 = vld [vmem:[%s2920_s3 + $0x140] sm:$0xf0] }
 0x1dd   :  { %760 = vmatmul.bf16.vlgmr.msra.gmra.mxu0 %v685_v63  ;;  %v2015_v63 = vor.u32 %v2188_v53, %v2012_v57  ;;  %v2047_v53 = vor.u32 %v2199_v41, %v2046_v40  ;;  %v1903_v57 = vor.u32 %v2160_v48, %v1900_v49  ;;  %v1908_v40 = vld [vmem:[%s2920_s3 + $0x9c] sm:$0xf0]  ;;  %v1914_v41 = vld [vmem:[%s2920_s3 + $0x88] sm:$0xf]  ;;  %v1886_v49 = vld [vmem:[%s2920_s3 + $0x50] sm:$0xf] }
 0x1de   :  { %v682_v0 = vpop.f32.mrf.mxu2  ;;  %v1911_v43 = vor.u32 %v2161_v38, %v1908_v40  ;;  %v1915_v44 = vor.u32 %v2165_v42, %v1914_v41  ;;  %v1880_v48 = vld [vmem:[%s2920_s3 + $0x64] sm:$0xf0] }
 0x1df   :  { %v2170_v0 = vld [vmem:[%s2920_s3 + $0xc8] sm:$0xf0]  ;;  %1340 = vmatpush.bf16.msrb.mxu3 %v2015_v63  ;;  %1352 = vmatpush.bf16.msra.mxu2 %v2047_v53 }
 0x1e0   :  { %v1927_v8 = vor.u32 %v2170_v0, %v1926_v62  ;;  %v2193_v62 = vld [vmem:[%s2920_s3 + $0x180] sm:$0xf0]  ;;  %v2019_v0 = vor.u32 %v2192_v58, %v2018_v55  ;;  %v2150_v55 = vld [vmem:[%s2920_s3 + $0x28] sm:$0xf0]  ;;  %v1858_v58 = vld [vmem:[%s2920_s3 + $0x18] sm:$0xf] }
 0x1e1   :  { %v2027_v2 = vor.u32 %v2193_v62, %v2026_v61  ;;  %v1859_v62 = vor.u32 %v2151_v59, %v1858_v58 }
 0x1e2   :  { %1330 = vmatpush.bf16.msrb.mxu1 %v1927_v8  ;;  %v2182_v8 = vld [vmem:[%s2920_s3 + $0x12c] sm:$0xf] }
 0x1e3   :  { %1341 = vmatpush.bf16.msrb.mxu3 %v1987_v6  ;;  %1353 = vmatpush.bf16.msra.mxu2 %v2019_v0  ;;  %v1875_v6 = vor.u32 %v2153_v3, %v1872_v4 }
 0x25a   :  { %v761_v10 = vpop.f32.mrf.mxu0 }
 0x25b   :  { %v762_v11 = vadd.f32 %v761_v10, %v703_v9  ;;  %v2159_v9 = vld [vmem:[%s2920_s3 + $0x74] sm:$0xf]  ;;  %v2174_v10 = vld [vmem:[%s2920_s3 + $0xec] sm:$0xf] }
 0x25d   :  { %v765_v12 = vmax.f32 %v762_v11, 0.0  ;;  %v1956_v11 = vld [vmem:[%s2920_s3 + $0x104] sm:$0xf0] }
 0x25e   :  { %v1959_v18 = vor.u32 %v2174_v10, %v1956_v11  ;;  %v1991_v10 = vor.u32 %v2185_v7, %v1990_v5  ;;  %v1830_v5 = vld [vmem:[%s2919_s4 + $0x6] ss:$8 sm:$0xf] }
 0x25f   :  { %v766_v13 = vpack.c.bf16 %v765_v12, %v765_v12  ;;  %v1892_v12 = vld [vmem:[%s2920_s3 + $0x8c] sm:$0xf0] }
 0x260   :  { %v1895_v19 = vor.u32 %v2159_v9, %v1892_v12  ;;  %1342 = vmatpush.bf16.msrb.mxu3 %v1959_v18  ;;  %v1992_v9 = vld [vmem:[%s2920_s3 + $0x144] sm:$0xf0]  ;;  %v1998_v12 = vld [vmem:[%s2920_s3 + $0x130] sm:$0xf]  ;;  %1354 = vmatpush.bf16.msra.mxu2 %v1991_v10  ;;  %v1847_v18 = vor.u32 %v2146_v15, %v1844_v16 }
 0x261   :  { %841 = vmatmul.bf16.vlgmr.msra.gmra.mxu1 %v766_v13  ;;  %v1898_v13 = vld [vmem:[%s2920_s3 + $0x78] sm:$0xf]  ;;  %v1995_v11 = vor.u32 %v2182_v8, %v1992_v9 }
 0x262   :  { %v763_v14 = vpop.f32.mrf.mxu0  ;;  %1318 = vmatpush.bf16.msrb.mxu0 %v1895_v19  ;;  %v2178_v19 = vld [vmem:[%s2920_s3 + $0x108] sm:$0xf0] }
 0x263   :  { %v2163_v14 = vld [vmem:[%s2920_s3 + $0x90] sm:$0xf0]  ;;  %v1963_v22 = vor.u32 %v2178_v19, %v1962_v17 }
 0x264   :  { %v1899_v20 = vor.u32 %v2163_v14, %v1898_v13  ;;  %1343 = vmatpush.bf16.msrb.mxu3 %v1931_v32  ;;  %v2186_v13 = vld [vmem:[%s2920_s3 + $0x148] sm:$0xf0]  ;;  %v1942_v32 = vld [vmem:[%s2920_s3 + $0xc0] sm:$0xf] }
 0x265   :  { %v1999_v14 = vor.u32 %v2186_v13, %v1998_v12  ;;  %1355 = vmatpush.bf16.msra.mxu2 %v1963_v22 }
 0x266   :  { %1331 = vmatpush.bf16.msrb.mxu1 %v1899_v20  ;;  %1319 = vmatpush.bf16.msrb.mxu0 %v1867_v34  ;;  %v2175_v20 = vld [vmem:[%s2920_s3 + $0xf4] sm:$0xf]  ;;  %v1939_v34 = vor.u32 %v2168_v29, %v1936_v31 }
 0x267   :  { %v1967_v23 = vor.u32 %v2175_v20, %v1964_v21 }
 0x268   :  { %1344 = vmatpush.bf16.msrb.mxu3 %v1903_v57  ;;  %v1852_v57 = vld [vmem:[%s2920_s3 + $0x2c] sm:$0xf0] }
 0x26a   :  { %1332 = vmatpush.bf16.msrb.mxu1 %v1871_v35  ;;  %1320 = vmatpush.bf16.msrb.mxu0 %v1839_v50  ;;  %v2158_v50 = vld [vmem:[%s2920_s3 + $0x68] sm:$0xf0] }
 0x26b   :  { %v1887_v53 = vor.u32 %v2158_v50, %v1886_v49 }
 0x26c   :  { %1345 = vmatpush.bf16.msrb.mxu3 %v1875_v6  ;;  %v1831_v6 = vld [vmem:[%s2919_s4 + $0x6] ss:$8 sm:$0x70] }
 0x26d   :  { %v996_v7 = vor.u32 %v1831_v6, %v1830_v5 }
 0x26e   :  { %1333 = vmatpush.bf16.msrb.mxu1 %v1843_v51  ;;  %1365 = vmatpush.bf16.msra.mxu0 %v2051_v54  ;;  %v1850_v54 = vld [vmem:[%s2920_s3 + $0x10] sm:$0xf] }
 0x26f   :  { %v1851_v60 = vor.u32 %v2150_v55, %v1850_v54  ;;  %v999_v8 = vperm.slane %v996_v7, 1  ;;  %v1000_v9 = vperm.slane %v996_v7, 2  ;;  %v1001_v15 = vperm.slane %v996_v7, 3 }
 0x270   :  { %1346 = vmatpush.bf16.msrb.mxu3 %v1847_v18  ;;  %v1003_v24 = vperm.slane %v996_v7, 5 }
 0x272   :  { %1378 = vmatpush.bf16.msra.mxu1 %v2055_v56  ;;  %1366 = vmatpush.bf16.msra.mxu0 %v2023_v1  ;;  %v2147_v56 = vld [vmem:[%s2920_s3 + $0x14] sm:$0xf] }
 0x273   :  { %v1855_v61 = vor.u32 %v2147_v56, %v1852_v57 }
 0x276   :  { %1379 = vmatpush.bf16.msra.mxu1 %v2027_v2  ;;  %1367 = vmatpush.bf16.msra.mxu0 %v1995_v11 }
 0x27a   :  { %1380 = vmatpush.bf16.msra.mxu1 %v1999_v14  ;;  %1368 = vmatpush.bf16.msra.mxu0 %v1967_v23  ;;  %v998_v14 = vperm.slane %v996_v7, 0 }
 0x27e   :  { %1381 = vmatpush.bf16.msra.mxu1 %v1971_v26  ;;  %1369 = vmatpush.bf16.msra.mxu0 %v1939_v34  ;;  %v1004_v26 = vperm.slane %v996_v7, 6  ;;  %v1002_v34 = vperm.slane %v996_v7, 4 }
 0x282   :  { %1370 = vmatpush.bf16.msra.mxu0 %v1911_v43 }
 0x2de   :  { %v842_v33 = vpop.f32.mrf.mxu1 }
 0x2df   :  { %v843_v39 = vadd.f32 %v842_v33, %v784_v27  ;;  %v1934_v27 = vld [vmem:[%s2920_s3 + $0xb8] sm:$0xf]  ;;  %v2172_v33 = vld [vmem:[%s2920_s3 + $0xd8] sm:$0xf0] }
 0x2e0   :  { %v1935_v30 = vor.u32 %v2171_v28, %v1934_v27  ;;  %v1943_v35 = vor.u32 %v2172_v33, %v1942_v32 }
 0x2e1   :  { %v846_v46 = vmax.f32 %v843_v39, 0.0  ;;  %v1907_v39 = vor.u32 %v2164_v37, %v1906_v36 }
 0x2e2   :  { %1356 = vmatpush.bf16.msra.mxu2 %v1935_v30  ;;  %1382 = vmatpush.bf16.msra.mxu1 %v1943_v35 }
 0x2e3   :  { %v847_v52 = vpack.c.bf16 %v846_v46, %v846_v46  ;;  %v2157_v46 = vld [vmem:[%s2920_s3 + $0x60] sm:$0xf0] }
 0x2e4   :  { %v1879_v51 = vor.u32 %v2157_v46, %v1878_v45 }
 0x2e5   :  { %922 = vmatmul.bf16.vlgmr.msra.gmra.mxu3 %v847_v52  ;;  %v1883_v52 = vor.u32 %v2154_v47, %v1880_v48 }
 0x2e6   :  { %v844_v63 = vpop.f32.mrf.mxu1  ;;  %1357 = vmatpush.bf16.msra.mxu2 %v1907_v39  ;;  %1383 = vmatpush.bf16.msra.mxu1 %v1915_v44 }
 0x2e7   :  { %1371 = vmatpush.bf16.msra.mxu0 %v1883_v52  ;;  %v865_v63 = vld [vmem:[%s2919_s4 + $0x5] ss:$0 sm:$0xff] }
 0x2ea   :  { %1358 = vmatpush.bf16.msra.mxu2 %v1879_v51  ;;  %1384 = vmatpush.bf16.msra.mxu1 %v1887_v53 }
 0x2eb   :  { %1372 = vmatpush.bf16.msra.mxu0 %v1855_v61 }
 0x2ee   :  { %1359 = vmatpush.bf16.msra.mxu2 %v1851_v60  ;;  %1385 = vmatpush.bf16.msra.mxu1 %v1859_v62 }
 0x368   :  { %v923_v0 = vpop.f32.mrf.mxu3 }
 0x369   :  { %v924_v1 = vadd.f32 %v923_v0, %v865_v63 }
 0x36b   :  { %v927_v2 = vmax.f32 %v924_v1, 0.0 }
 0x36d   :  { %v928_v3 = vpack.c.bf16 %v927_v2, %v927_v2 }
 0x36f   :  { %1308 = vmatmul.bf16.vlgmr.msrb.gmra.mxu2 %v928_v3  ;;  %1321 = vmatmul.bf16.vlgmr.msrb.gmra.mxu0 %v928_v3 }
 0x370   :  { %1334 = vmatmul.bf16.vlgmr.msrb.gmra.mxu1 %v928_v3  ;;  %1347 = vmatmul.bf16.vlgmr.msrb.gmra.mxu3 %v928_v3  ;;  %v925_v4 = vpop.f32.mrf.mxu3 }
 0x37f   :  { %1360 = vmatmul.bf16.vlgmr.msra.gmra.mxu2 %v928_v3  ;;  %1373 = vmatmul.bf16.vlgmr.msra.gmra.mxu0 %v928_v3 }
 0x380   :  { %1386 = vmatmul.bf16.vlgmr.msra.gmra.mxu1 %v928_v3 }
 0x3ec   :  { %v1322_v10 = vpop.f32.mrf.mxu0 }
 0x3ed   :  { %v1323_v11 = vadd.f32 %v1322_v10, %v999_v8  ;;  %v1335_v12 = vpop.f32.mrf.mxu1 }
 0x3ee   :  { %v1336_v13 = vadd.f32 %v1335_v12, %v1000_v9 }
 0x3ef   :  { %2201 = vtanh.f32 %v1323_v11 }
 0x3f0   :  { %2203 = vtanh.f32 %v1336_v13 }
 0x3f2   :  { %v1309_v16 = vpop.f32.mrf.mxu2 }
 0x3f3   :  { %v1310_v17 = vadd.f32 %v1309_v16, %v998_v14  ;;  %v1348_v18 = vpop.f32.mrf.mxu3 }
 0x3f4   :  { %v1349_v19 = vadd.f32 %v1348_v18, %v1001_v15  ;;  %v1324_v20 = vpop.f32.mrf.mxu0 }
 0x3f5   :  { %v2202_v21 = vpop.eup %2201  ;;  %2205 = vtanh.f32 %v1310_v17  ;;  %v1337_v22 = vpop.f32.mrf.mxu1 }
 0x3f6   :  { %v2204_v23 = vpop.eup %2203  ;;  %1399 = vst [vmem:[%s2921_s5 + $0x8] sm:$0xff] %v2202_v21  ;;  %2207 = vtanh.f32 %v1349_v19 }
 0x3f7   :  { %1400 = vst [vmem:[%s2921_s5 + $0x10] sm:$0xff] %v2204_v23 }
 0x3fa   :  { %v1311_v25 = vpop.f32.mrf.mxu2 }
 0x3fb   :  { %v2206_v27 = vpop.eup %2205  ;;  %v1350_v28 = vpop.f32.mrf.mxu3 }
 0x3fc   :  { %v2208_v29 = vpop.eup %2207  ;;  %1398 = vst [vmem:[%s2921_s5] sm:$0xff] %v2206_v27  ;;  %v1374_v30 = vpop.f32.mrf.mxu0 }
 0x3fd   :  { %1401 = vst [vmem:[%s2921_s5 + $0x18] sm:$0xff] %v2208_v29  ;;  %v1375_v31 = vadd.f32 %v1374_v30, %v1003_v24  ;;  %v1387_v32 = vpop.f32.mrf.mxu1 }
 0x3fe   :  { %v1388_v33 = vadd.f32 %v1387_v32, %v1004_v26 }
 0x3ff   :  { %2209 = vtanh.f32 %v1375_v31 }
 0x400   :  { %2211 = vtanh.f32 %v1388_v33 }
 0x402   :  { %v1361_v35 = vpop.f32.mrf.mxu2 }
 0x403   :  { %v1362_v36 = vadd.f32 %v1361_v35, %v1002_v34 }
 0x404   :  { %v1376_v37 = vpop.f32.mrf.mxu0 }
 0x405   :  { %v2210_v38 = vpop.eup %2209  ;;  %2213 = vtanh.f32 %v1362_v36  ;;  %v1389_v39 = vpop.f32.mrf.mxu1 }
 0x406   :  { %v2212_v40 = vpop.eup %2211  ;;  %1403 = vst [vmem:[%s2921_s5 + $0x28] sm:$0xff] %v2210_v38 }
 0x407   :  { %1404 = vst.msk [vmem:[%s2921_s5 + $0x30] sm:$0xff] %vm428_vm0, %v2212_v40 }
 0x40a   :  { %v1363_v41 = vpop.f32.mrf.mxu2 }
 0x40b   :  { %v2214_v42 = vpop.eup %2213 }
 0x40c   :  { %1402 = vst [vmem:[%s2921_s5 + $0x20] sm:$0xff] %v2214_v42 }

</bundles_post_ra>
